<compile_context>
chip_gen: v7x
topology: tpu7x:2x2x1
jax: 0.10.0
libtpu: 0.0.40
codegen_flags: <defaults>
</compile_context>

<pallas_src>
import functools

import jax
import jax.numpy as jnp
from jax.experimental import pallas as pl
from jax.experimental.pallas import tpu as pltpu


def _round_up(a, b):
    return (a + b - 1) // b * b


# ----------------------------------------------------------------------------
# Fused Pallas kernel
# ----------------------------------------------------------------------------
def _projection_head_kernel(x_ref, w1_ref, b1_ref, w2_ref, b2_ref,
                            gamma_ref, beta_ref, o_ref, *, eps):
    # projection = Linear(E -> P): bf16 MXU inputs, f32 accumulation.
    x = x_ref[...].astype(jnp.bfloat16)                                   # (tm, E)
    proj = jnp.dot(x, w1_ref[...],
                   preferred_element_type=jnp.float32) + b1_ref[...]      # (tm, P) f32

    # GELU (tanh approximation), f32 elementwise.
    c = 0.7978845608028654  # sqrt(2/pi)
    g = 0.5 * proj * (1.0 + jnp.tanh(c * (proj + 0.044715 * proj * proj * proj)))

    # fc = Linear(P -> P): bf16 into the MXU again, f32 accumulation.
    h = jnp.dot(g.astype(jnp.bfloat16), w2_ref[...],
                preferred_element_type=jnp.float32) + b2_ref[...]

    # dropout: identity at inference (eval mode).

    # residual add (f32)
    h = h + proj

    # LayerNorm over last dim (torch nn.LayerNorm(P), eps=1e-5), f32 math.
    mu = jnp.mean(h, axis=-1, keepdims=True)
    hc = h - mu
    var = jnp.mean(hc * hc, axis=-1, keepdims=True)
    o_ref[...] = (hc * jax.lax.rsqrt(var + eps)
                  * gamma_ref[...] + beta_ref[...]).astype(o_ref.dtype)


def projection_head(x, params, *, eps=1e-5, tile_m=256):
    """x: (M, E) -> (M, P).  Weights stored as (in, out) == torch W.T."""
    M, E = x.shape
    P = params["w1"].shape[1]

    # Row tile: large enough to fill the MXU (256 on v6e/v7x, 128-multiple on
    # v5e) but never larger than the sublane-rounded batch, so tiny batches run
    # as a single grid step.
    tile_m = min(tile_m, _round_up(M, 8))
    Mp = _round_up(M, tile_m)
    if Mp != M:
        x = jnp.pad(x, ((0, Mp - M), (0, 0)))

    # Weights in bf16 for the MXU (halves HBM/VMEM bytes); per-lane vectors f32.
    w1 = params["w1"].astype(jnp.bfloat16)
    w2 = params["w2"].astype(jnp.bfloat16)
    b1 = params["b1"].reshape(1, P).astype(jnp.float32)
    b2 = params["b2"].reshape(1, P).astype(jnp.float32)
    gamma = params["gamma"].reshape(1, P).astype(jnp.float32)
    beta = params["beta"].reshape(1, P).astype(jnp.float32)

    kernel = functools.partial(_projection_head_kernel, eps=eps)

    # Explicit VMEM budget, sized so it also fits v7x's 64 MiB physical VMEM:
    #   weights (assume worst-case double buffering) + double-buffered x/out
    #   row tiles + f32 intermediates + headroom.
    weight_bytes = 2 * ((E * P + P * P) * 2 + 4 * P * 4)
    stream_bytes = 2 * tile_m * (E + P) * 4
    interm_bytes = 4 * tile_m * P * 4 + tile_m * E * 2
    vmem_limit = int(min(64 << 20,
                         max(16 << 20,
                             weight_bytes + stream_bytes + interm_bytes + (4 << 20))))

    def make_call(single_buffer_weights):
        if single_buffer_weights:
            wspec = lambda shape: pl.BlockSpec(shape, lambda i: (0, 0),
                                               pipeline_mode=pl.Buffered(1))
        else:
            wspec = lambda shape: pl.BlockSpec(shape, lambda i: (0, 0))
        return pl.pallas_call(
            kernel,
            out_shape=jax.ShapeDtypeStruct((Mp, P), jnp.float32),
            grid=(Mp // tile_m,),
            in_specs=[
                pl.BlockSpec((tile_m, E), lambda i: (i, 0)),   # x row tile (streamed)
                wspec((E, P)),                                 # w1 (VMEM-resident)
                wspec((1, P)),                                 # b1
                wspec((P, P)),                                 # w2 (VMEM-resident)
                wspec((1, P)),                                 # b2
                wspec((1, P)),                                 # gamma
                wspec((1, P)),                                 # beta
            ],
            out_specs=pl.BlockSpec((tile_m, P), lambda i: (i, 0)),
            compiler_params=pltpu.CompilerParams(
                dimension_semantics=("parallel",),
                vmem_limit_bytes=vmem_limit),
        )

    args = (x, w1, b1, w2, b2, gamma, beta)
    if hasattr(pl, "Buffered"):
        try:
            out = make_call(True)(*args)
        except Exception:
            # pipeline_mode on BlockSpec not accepted by this JAX version;
            # fall back to default double buffering (identical results).
            out = make_call(False)(*args)
    else:
        out = make_call(False)(*args)
    return out[:M]


# ----------------------------------------------------------------------------
# Pure-JAX reference mirroring the kernel's math (bf16 matmuls, f32 everything
# else) for a correctness check.
# ----------------------------------------------------------------------------
def projection_head_ref(x, params, eps=1e-5):
    w1 = params["w1"].astype(jnp.bfloat16)
    w2 = params["w2"].astype(jnp.bfloat16)
    proj = jnp.dot(x.astype(jnp.bfloat16), w1,
                   preferred_element_type=jnp.float32) + params["b1"]
    c = 0.7978845608028654
    g = 0.5 * proj * (1.0 + jnp.tanh(c * (proj + 0.044715 * proj ** 3)))
    h = jnp.dot(g.astype(jnp.bfloat16), w2,
                preferred_element_type=jnp.float32) + params["b2"]
    h = h + proj
    mu = jnp.mean(h, axis=-1, keepdims=True)
    var = jnp.mean((h - mu) ** 2, axis=-1, keepdims=True)
    return (h - mu) * jax.lax.rsqrt(var + eps) * params["gamma"] + params["beta"]


# ----------------------------------------------------------------------------
# Deterministic parameter init (same structural shapes as the torch module)
# ----------------------------------------------------------------------------
def init_params(key, embedding_dim, projection_dim):
    k1, k2 = jax.random.split(key, 2)

    def w(k, shape, std=0.02):
        return (std * jax.random.normal(k, shape)).astype(jnp.float32)

    return {
        "w1": w(k1, (embedding_dim, projection_dim)),       # torch W.T
        "b1": jnp.zeros((projection_dim,), jnp.float32),
        "w2": w(k2, (projection_dim, projection_dim)),      # torch W.T
        "b2": jnp.zeros((projection_dim,), jnp.float32),
        "gamma": jnp.ones((projection_dim,), jnp.float32),
        "beta": jnp.zeros((projection_dim,), jnp.float32),
    }


if __name__ == "__main__":
    # Small, lane-dense config: embedding_dim / projection_dim are 128-multiples,
    # batch is a multiple of 8 (sublanes); the whole batch is one grid step.
    batch, embedding_dim, projection_dim = 16, 256, 128

    key = jax.random.PRNGKey(0)
    kx, kp = jax.random.split(key)
    x = jax.random.normal(kx, (batch, embedding_dim), dtype=jnp.float32)
    params = init_params(kp, embedding_dim, projection_dim)

    out = projection_head(x, params)
    out = jax.block_until_ready(out)
    assert out.shape == (batch, projection_dim)

    ref = projection_head_ref(x, params)
    assert jnp.allclose(out, ref, atol=2e-3, rtol=2e-3), "mismatch vs JAX reference"

    print("KERNEL_OK")
</pallas_src>

<mosaic_0001>
module attributes {stable_mosaic.version = 11 : i64} {
  func.func @_projection_head_kernel(%arg0: i32, %arg1: memref<16x256xf32, #tpu.memory_space<vmem>>, %arg2: memref<256x128xbf16, #tpu.memory_space<vmem>>, %arg3: memref<1x128xf32, #tpu.memory_space<vmem>>, %arg4: memref<128x128xbf16, #tpu.memory_space<vmem>>, %arg5: memref<1x128xf32, #tpu.memory_space<vmem>>, %arg6: memref<1x128xf32, #tpu.memory_space<vmem>>, %arg7: memref<1x128xf32, #tpu.memory_space<vmem>>, %arg8: memref<16x128xf32, #tpu.memory_space<vmem>>) attributes {dimension_semantics = [#tpu.dimension_semantics<parallel>], iteration_bounds = array<i64: 1>, scalar_prefetch = 0 : i64, scratch_operands = 0 : i64, tpu.core_type = #tpu.core_type<tc>, window_params = [{transform_indices = @transform_0, window_bounds = array<i64: 16, 256>}, {pipeline_mode = #tpu.pipeline_mode<synchronous>, transform_indices = @transform_1, window_bounds = array<i64: 256, 128>}, {pipeline_mode = #tpu.pipeline_mode<synchronous>, transform_indices = @transform_2, window_bounds = array<i64: 1, 128>}, {pipeline_mode = #tpu.pipeline_mode<synchronous>, transform_indices = @transform_3, window_bounds = array<i64: 128, 128>}, {pipeline_mode = #tpu.pipeline_mode<synchronous>, transform_indices = @transform_4, window_bounds = array<i64: 1, 128>}, {pipeline_mode = #tpu.pipeline_mode<synchronous>, transform_indices = @transform_5, window_bounds = array<i64: 1, 128>}, {pipeline_mode = #tpu.pipeline_mode<synchronous>, transform_indices = @transform_6, window_bounds = array<i64: 1, 128>}, {transform_indices = @transform_7, window_bounds = array<i64: 16, 128>}]} {
    %c0 = arith.constant 0 : index
    %c0_0 = arith.constant 0 : index
    %0 = vector.load %arg1[%c0, %c0_0] : memref<16x256xf32, #tpu.memory_space<vmem>>, vector<16x256xf32>
    %1 = arith.truncf %0 : vector<16x256xf32> to vector<16x256xbf16>
    %c0_1 = arith.constant 0 : index
    %c0_2 = arith.constant 0 : index
    %2 = vector.load %arg2[%c0_1, %c0_2] : memref<256x128xbf16, #tpu.memory_space<vmem>>, vector<256x128xbf16>
    %cst = arith.constant dense<0.000000e+00> : vector<16x128xf32>
    %3 = tpu.matmul %1, %2, %cst {dimension_numbers = #tpu.dot_dimension_numbers<[1], [0], [0], [1], [0, 0, 1, 1], [], []>} : vector<16x256xbf16>, vector<256x128xbf16>, vector<16x128xf32> -> vector<16x128xf32>
    %c0_3 = arith.constant 0 : index
    %c0_4 = arith.constant 0 : index
    %4 = vector.load %arg3[%c0_3, %c0_4] : memref<1x128xf32, #tpu.memory_space<vmem>>, vector<1x128xf32>
    %5 = vector.broadcast %4 : vector<1x128xf32> to vector<16x128xf32>
    %6 = arith.addf %3, %5 : vector<16x128xf32>
    %cst_5 = arith.constant 5.000000e-01 : f32
    %7 = vector.broadcast %cst_5 : f32 to vector<16x128xf32>
    %8 = arith.mulf %7, %6 : vector<16x128xf32>
    %cst_6 = arith.constant 4.471500e-02 : f32
    %9 = vector.broadcast %cst_6 : f32 to vector<16x128xf32>
    %10 = arith.mulf %9, %6 : vector<16x128xf32>
    %11 = arith.mulf %10, %6 : vector<16x128xf32>
    %12 = arith.mulf %11, %6 : vector<16x128xf32>
    %13 = arith.addf %6, %12 : vector<16x128xf32>
    %cst_7 = arith.constant 0.797884583 : f32
    %14 = vector.broadcast %cst_7 : f32 to vector<16x128xf32>
    %15 = arith.mulf %14, %13 : vector<16x128xf32>
    %16 = math.tanh %15 : vector<16x128xf32>
    %cst_8 = arith.constant 1.000000e+00 : f32
    %17 = vector.broadcast %cst_8 : f32 to vector<16x128xf32>
    %18 = arith.addf %17, %16 : vector<16x128xf32>
    %19 = arith.mulf %8, %18 : vector<16x128xf32>
    %20 = arith.truncf %19 : vector<16x128xf32> to vector<16x128xbf16>
    %c0_9 = arith.constant 0 : index
    %c0_10 = arith.constant 0 : index
    %21 = vector.load %arg4[%c0_9, %c0_10] : memref<128x128xbf16, #tpu.memory_space<vmem>>, vector<128x128xbf16>
    %cst_11 = arith.constant dense<0.000000e+00> : vector<16x128xf32>
    %22 = tpu.matmul %20, %21, %cst_11 {dimension_numbers = #tpu.dot_dimension_numbers<[1], [0], [0], [1], [0, 0, 1, 1], [], []>} : vector<16x128xbf16>, vector<128x128xbf16>, vector<16x128xf32> -> vector<16x128xf32>
    %c0_12 = arith.constant 0 : index
    %c0_13 = arith.constant 0 : index
    %23 = vector.load %arg5[%c0_12, %c0_13] : memref<1x128xf32, #tpu.memory_space<vmem>>, vector<1x128xf32>
    %24 = vector.broadcast %23 : vector<1x128xf32> to vector<16x128xf32>
    %25 = arith.addf %22, %24 : vector<16x128xf32>
    %26 = arith.addf %25, %6 : vector<16x128xf32>
    %cst_14 = arith.constant dense<0.000000e+00> : vector<16xf32>
    %27 = vector.multi_reduction <add>, %26, %cst_14 [1] : vector<16x128xf32> to vector<16xf32>
    %28 = vector.shape_cast %27 : vector<16xf32> to vector<16x1xf32>
    %cst_15 = arith.constant 1.280000e+02 : f32
    %29 = vector.broadcast %cst_15 : f32 to vector<16x1xf32>
    %30 = arith.divf %28, %29 : vector<16x1xf32>
    %31 = vector.broadcast %30 : vector<16x1xf32> to vector<16x128xf32>
    %32 = arith.subf %26, %31 : vector<16x128xf32>
    %33 = arith.mulf %32, %32 : vector<16x128xf32>
    %cst_16 = arith.constant dense<0.000000e+00> : vector<16xf32>
    %34 = vector.multi_reduction <add>, %33, %cst_16 [1] : vector<16x128xf32> to vector<16xf32>
    %35 = vector.shape_cast %34 : vector<16xf32> to vector<16x1xf32>
    %cst_17 = arith.constant 1.280000e+02 : f32
    %36 = vector.broadcast %cst_17 : f32 to vector<16x1xf32>
    %37 = arith.divf %35, %36 : vector<16x1xf32>
    %cst_18 = arith.constant 9.99999974E-6 : f32
    %38 = vector.broadcast %cst_18 : f32 to vector<16x1xf32>
    %39 = arith.addf %37, %38 : vector<16x1xf32>
    %40 = math.rsqrt %39 : vector<16x1xf32>
    %41 = vector.broadcast %40 : vector<16x1xf32> to vector<16x128xf32>
    %42 = arith.mulf %32, %41 : vector<16x128xf32>
    %c0_19 = arith.constant 0 : index
    %c0_20 = arith.constant 0 : index
    %43 = vector.load %arg6[%c0_19, %c0_20] : memref<1x128xf32, #tpu.memory_space<vmem>>, vector<1x128xf32>
    %44 = vector.broadcast %43 : vector<1x128xf32> to vector<16x128xf32>
    %45 = arith.mulf %42, %44 : vector<16x128xf32>
    %c0_21 = arith.constant 0 : index
    %c0_22 = arith.constant 0 : index
    %46 = vector.load %arg7[%c0_21, %c0_22] : memref<1x128xf32, #tpu.memory_space<vmem>>, vector<1x128xf32>
    %47 = vector.broadcast %46 : vector<1x128xf32> to vector<16x128xf32>
    %48 = arith.addf %45, %47 : vector<16x128xf32>
    %c0_23 = arith.constant 0 : index
    %c0_24 = arith.constant 0 : index
    %49 = vector.load %arg8[%c0_23, %c0_24] : memref<16x128xf32, #tpu.memory_space<vmem>>, vector<16x128xf32>
    tpu.vector_store %arg8[%c0_23, %c0_24], %48 {strides = array<i32>} : memref<16x128xf32, #tpu.memory_space<vmem>>, vector<16x128xf32>,
    return
  }
  func.func @transform_0(%arg0: i32) -> (i32, i32) {
    %c0_i32 = arith.constant 0 : i32
    %c0_i32_0 = arith.constant 0 : i32
    return %arg0, %c0_i32 : i32, i32
  }
  func.func @transform_1(%arg0: i32) -> (i32, i32) {
    %c0_i32 = arith.constant 0 : i32
    %c0_i32_0 = arith.constant 0 : i32
    %c0_i32_1 = arith.constant 0 : i32
    return %c0_i32, %c0_i32_0 : i32, i32
  }
  func.func @transform_2(%arg0: i32) -> (i32, i32) {
    %c0_i32 = arith.constant 0 : i32
    %c0_i32_0 = arith.constant 0 : i32
    %c0_i32_1 = arith.constant 0 : i32
    return %c0_i32, %c0_i32_0 : i32, i32
  }
  func.func @transform_3(%arg0: i32) -> (i32, i32) {
    %c0_i32 = arith.constant 0 : i32
    %c0_i32_0 = arith.constant 0 : i32
    %c0_i32_1 = arith.constant 0 : i32
    return %c0_i32, %c0_i32_0 : i32, i32
  }
  func.func @transform_4(%arg0: i32) -> (i32, i32) {
    %c0_i32 = arith.constant 0 : i32
    %c0_i32_0 = arith.constant 0 : i32
    %c0_i32_1 = arith.constant 0 : i32
    return %c0_i32, %c0_i32_0 : i32, i32
  }
  func.func @transform_5(%arg0: i32) -> (i32, i32) {
    %c0_i32 = arith.constant 0 : i32
    %c0_i32_0 = arith.constant 0 : i32
    %c0_i32_1 = arith.constant 0 : i32
    return %c0_i32, %c0_i32_0 : i32, i32
  }
  func.func @transform_6(%arg0: i32) -> (i32, i32) {
    %c0_i32 = arith.constant 0 : i32
    %c0_i32_0 = arith.constant 0 : i32
    %c0_i32_1 = arith.constant 0 : i32
    return %c0_i32, %c0_i32_0 : i32, i32
  }
  func.func @transform_7(%arg0: i32) -> (i32, i32) {
    %c0_i32 = arith.constant 0 : i32
    %c0_i32_0 = arith.constant 0 : i32
    return %arg0, %c0_i32 : i32, i32
  }
}

module attributes {stable_mosaic.version = 11 : i64} {
  func.func @_projection_head_kernel(%arg0: i32, %arg1: memref<16x256xf32, #tpu.memory_space<vmem>>, %arg2: memref<256x128xbf16, #tpu.memory_space<vmem>>, %arg3: memref<1x128xf32, #tpu.memory_space<vmem>>, %arg4: memref<128x128xbf16, #tpu.memory_space<vmem>>, %arg5: memref<1x128xf32, #tpu.memory_space<vmem>>, %arg6: memref<1x128xf32, #tpu.memory_space<vmem>>, %arg7: memref<1x128xf32, #tpu.memory_space<vmem>>, %arg8: memref<16x128xf32, #tpu.memory_space<vmem>>) attributes {dimension_semantics = [#tpu.dimension_semantics<parallel>], iteration_bounds = array<i64: 1>, scalar_prefetch = 0 : i64, scratch_operands = 0 : i64, tpu.core_type = #tpu.core_type<tc>, window_params = [{transform_indices = @transform_0, window_bounds = array<i64: 16, 256>}, {pipeline_mode = #tpu.pipeline_mode<synchronous>, transform_indices = @transform_1, window_bounds = array<i64: 256, 128>}, {pipeline_mode = #tpu.pipeline_mode<synchronous>, transform_indices = @transform_2, window_bounds = array<i64: 1, 128>}, {pipeline_mode = #tpu.pipeline_mode<synchronous>, transform_indices = @transform_3, window_bounds = array<i64: 128, 128>}, {pipeline_mode = #tpu.pipeline_mode<synchronous>, transform_indices = @transform_4, window_bounds = array<i64: 1, 128>}, {pipeline_mode = #tpu.pipeline_mode<synchronous>, transform_indices = @transform_5, window_bounds = array<i64: 1, 128>}, {pipeline_mode = #tpu.pipeline_mode<synchronous>, transform_indices = @transform_6, window_bounds = array<i64: 1, 128>}, {transform_indices = @transform_7, window_bounds = array<i64: 16, 128>}]} {
    %c0 = arith.constant 0 : index
    %c0_0 = arith.constant 0 : index
    %0 = vector.load %arg1[%c0, %c0_0] : memref<16x256xf32, #tpu.memory_space<vmem>>, vector<16x256xf32>
    %1 = arith.truncf %0 : vector<16x256xf32> to vector<16x256xbf16>
    %c0_1 = arith.constant 0 : index
    %c0_2 = arith.constant 0 : index
    %2 = vector.load %arg2[%c0_1, %c0_2] : memref<256x128xbf16, #tpu.memory_space<vmem>>, vector<256x128xbf16>
    %cst = arith.constant dense<0.000000e+00> : vector<16x128xf32>
    %3 = tpu.matmul %1, %2, %cst {dimension_numbers = #tpu.dot_dimension_numbers<[1], [0], [0], [1], [0, 0, 1, 1], [], []>} : vector<16x256xbf16>, vector<256x128xbf16>, vector<16x128xf32> -> vector<16x128xf32>
    %c0_3 = arith.constant 0 : index
    %c0_4 = arith.constant 0 : index
    %4 = vector.load %arg3[%c0_3, %c0_4] : memref<1x128xf32, #tpu.memory_space<vmem>>, vector<1x128xf32>
    %5 = vector.broadcast %4 : vector<1x128xf32> to vector<16x128xf32>
    %6 = arith.addf %3, %5 : vector<16x128xf32>
    %cst_5 = arith.constant 5.000000e-01 : f32
    %7 = vector.broadcast %cst_5 : f32 to vector<16x128xf32>
    %8 = arith.mulf %7, %6 : vector<16x128xf32>
    %cst_6 = arith.constant 4.471500e-02 : f32
    %9 = vector.broadcast %cst_6 : f32 to vector<16x128xf32>
    %10 = arith.mulf %9, %6 : vector<16x128xf32>
    %11 = arith.mulf %10, %6 : vector<16x128xf32>
    %12 = arith.mulf %11, %6 : vector<16x128xf32>
    %13 = arith.addf %6, %12 : vector<16x128xf32>
    %cst_7 = arith.constant 0.797884583 : f32
    %14 = vector.broadcast %cst_7 : f32 to vector<16x128xf32>
    %15 = arith.mulf %14, %13 : vector<16x128xf32>
    %16 = math.tanh %15 : vector<16x128xf32>
    %cst_8 = arith.constant 1.000000e+00 : f32
    %17 = vector.broadcast %cst_8 : f32 to vector<16x128xf32>
    %18 = arith.addf %17, %16 : vector<16x128xf32>
    %19 = arith.mulf %8, %18 : vector<16x128xf32>
    %20 = arith.truncf %19 : vector<16x128xf32> to vector<16x128xbf16>
    %c0_9 = arith.constant 0 : index
    %c0_10 = arith.constant 0 : index
    %21 = vector.load %arg4[%c0_9, %c0_10] : memref<128x128xbf16, #tpu.memory_space<vmem>>, vector<128x128xbf16>
    %cst_11 = arith.constant dense<0.000000e+00> : vector<16x128xf32>
    %22 = tpu.matmul %20, %21, %cst_11 {dimension_numbers = #tpu.dot_dimension_numbers<[1], [0], [0], [1], [0, 0, 1, 1], [], []>} : vector<16x128xbf16>, vector<128x128xbf16>, vector<16x128xf32> -> vector<16x128xf32>
    %c0_12 = arith.constant 0 : index
    %c0_13 = arith.constant 0 : index
    %23 = vector.load %arg5[%c0_12, %c0_13] : memref<1x128xf32, #tpu.memory_space<vmem>>, vector<1x128xf32>
    %24 = vector.broadcast %23 : vector<1x128xf32> to vector<16x128xf32>
    %25 = arith.addf %22, %24 : vector<16x128xf32>
    %26 = arith.addf %25, %6 : vector<16x128xf32>
    %cst_14 = arith.constant dense<0.000000e+00> : vector<16xf32>
    %27 = vector.multi_reduction <add>, %26, %cst_14 [1] : vector<16x128xf32> to vector<16xf32>
    %28 = vector.shape_cast %27 : vector<16xf32> to vector<16x1xf32>
    %cst_15 = arith.constant 1.280000e+02 : f32
    %29 = vector.broadcast %cst_15 : f32 to vector<16x1xf32>
    %30 = arith.divf %28, %29 : vector<16x1xf32>
    %31 = vector.broadcast %30 : vector<16x1xf32> to vector<16x128xf32>
    %32 = arith.subf %26, %31 : vector<16x128xf32>
    %33 = arith.mulf %32, %32 : vector<16x128xf32>
    %cst_16 = arith.constant dense<0.000000e+00> : vector<16xf32>
    %34 = vector.multi_reduction <add>, %33, %cst_16 [1] : vector<16x128xf32> to vector<16xf32>
    %35 = vector.shape_cast %34 : vector<16xf32> to vector<16x1xf32>
    %cst_17 = arith.constant 1.280000e+02 : f32
    %36 = vector.broadcast %cst_17 : f32 to vector<16x1xf32>
    %37 = arith.divf %35, %36 : vector<16x1xf32>
    %cst_18 = arith.constant 9.99999974E-6 : f32
    %38 = vector.broadcast %cst_18 : f32 to vector<16x1xf32>
    %39 = arith.addf %37, %38 : vector<16x1xf32>
    %40 = math.rsqrt %39 : vector<16x1xf32>
    %41 = vector.broadcast %40 : vector<16x1xf32> to vector<16x128xf32>
    %42 = arith.mulf %32, %41 : vector<16x128xf32>
    %c0_19 = arith.constant 0 : index
    %c0_20 = arith.constant 0 : index
    %43 = vector.load %arg6[%c0_19, %c0_20] : memref<1x128xf32, #tpu.memory_space<vmem>>, vector<1x128xf32>
    %44 = vector.broadcast %43 : vector<1x128xf32> to vector<16x128xf32>
    %45 = arith.mulf %42, %44 : vector<16x128xf32>
    %c0_21 = arith.constant 0 : index
    %c0_22 = arith.constant 0 : index
    %46 = vector.load %arg7[%c0_21, %c0_22] : memref<1x128xf32, #tpu.memory_space<vmem>>, vector<1x128xf32>
    %47 = vector.broadcast %46 : vector<1x128xf32> to vector<16x128xf32>
    %48 = arith.addf %45, %47 : vector<16x128xf32>
    %c0_23 = arith.constant 0 : index
    %c0_24 = arith.constant 0 : index
    %49 = vector.load %arg8[%c0_23, %c0_24] : memref<16x128xf32, #tpu.memory_space<vmem>>, vector<16x128xf32>
    tpu.vector_store %arg8[%c0_23, %c0_24], %48 {strides = array<i32>} : memref<16x128xf32, #tpu.memory_space<vmem>>, vector<16x128xf32>,
    return
  }
  func.func @transform_0(%arg0: i32) -> (i32, i32) {
    %c0_i32 = arith.constant 0 : i32
    %c0_i32_0 = arith.constant 0 : i32
    return %arg0, %c0_i32 : i32, i32
  }
  func.func @transform_1(%arg0: i32) -> (i32, i32) {
    %c0_i32 = arith.constant 0 : i32
    %c0_i32_0 = arith.constant 0 : i32
    %c0_i32_1 = arith.constant 0 : i32
    return %c0_i32, %c0_i32_0 : i32, i32
  }
  func.func @transform_2(%arg0: i32) -> (i32, i32) {
    %c0_i32 = arith.constant 0 : i32
    %c0_i32_0 = arith.constant 0 : i32
    %c0_i32_1 = arith.constant 0 : i32
    return %c0_i32, %c0_i32_0 : i32, i32
  }
  func.func @transform_3(%arg0: i32) -> (i32, i32) {
    %c0_i32 = arith.constant 0 : i32
    %c0_i32_0 = arith.constant 0 : i32
    %c0_i32_1 = arith.constant 0 : i32
    return %c0_i32, %c0_i32_0 : i32, i32
  }
  func.func @transform_4(%arg0: i32) -> (i32, i32) {
    %c0_i32 = arith.constant 0 : i32
    %c0_i32_0 = arith.constant 0 : i32
    %c0_i32_1 = arith.constant 0 : i32
    return %c0_i32, %c0_i32_0 : i32, i32
  }
  func.func @transform_5(%arg0: i32) -> (i32, i32) {
    %c0_i32 = arith.constant 0 : i32
    %c0_i32_0 = arith.constant 0 : i32
    %c0_i32_1 = arith.constant 0 : i32
    return %c0_i32, %c0_i32_0 : i32, i32
  }
  func.func @transform_6(%arg0: i32) -> (i32, i32) {
    %c0_i32 = arith.constant 0 : i32
    %c0_i32_0 = arith.constant 0 : i32
    %c0_i32_1 = arith.constant 0 : i32
    return %c0_i32, %c0_i32_0 : i32, i32
  }
  func.func @transform_7(%arg0: i32) -> (i32, i32) {
    %c0_i32 = arith.constant 0 : i32
    %c0_i32_0 = arith.constant 0 : i32
    return %arg0, %c0_i32 : i32, i32
  }
}

</mosaic_0001>

<bundles_post_ra>
// kernel: tpu_custom_call.1
= control target key start
LH: loop header
LB: loop body
LE: loop exit
PB: predicated region body
PF: predicated region fallthrough
CT: control target
= control target key end

     0   :  { %12 = vsyncpa [#allocation3], 0  ;;  %s780_s0 = inlined_call_operand.hbm [shape: f32[16,256], index: 0, kind: input, shape index: {}]   ;;  %s781_s1 = inlined_call_operand.hbm [shape: bf16[256,128], index: 1, kind: input, shape index: {}]   ;;  %s782_s2 = inlined_call_operand.vmem [shape: f32[1,128], index: 2, kind: input, shape index: {}]   ;;  %s783_s3 = inlined_call_operand.hbm [shape: bf16[128,128], index: 3, kind: input, shape index: {}]   ;;  %s784_s4 = inlined_call_operand.vmem [shape: f32[1,128], index: 4, kind: input, shape index: {}]   ;;  %s785_s5 = inlined_call_operand.vmem [shape: f32[1,128], index: 5, kind: input, shape index: {}]   ;;  %s786_s6 = inlined_call_operand.vmem [shape: f32[1,128], index: 6, kind: input, shape index: {}]   ;;  %s787_s7 = inlined_call_operand.hbm [shape: f32[16,128], index: 7, kind: output, shape index: {}]  }
   0x1   :  { %13 = vsyncpa [#allocation6], 0 }
   0x2   :  { %14 = vsyncpa [#allocation4], 0  ;;  %s662_s24 = smov [#allocation5]   ;;  %s568_s28 = scalar_lea.hbm %s781_s1, 2048 }
   0x3   :  { %s32_s25 = sshll.u32 %s662_s24, 4  ;;  %p569_p0 = scmp.ne.s32.totalorder %s781_s1, %s568_s28  ;;  %s33_s25 = int_to_ptr.vmem [resolvable:$true] %s32_s25 }
   0x4   :  { %p572_p1 = scmp.lt.u32.totalorder %s568_s28, %s781_s1 }
   0x6   :  { %p574_p2 = pnand %p572_p1, %p569_p0 }
   0x8   :  { %577 = shalt.err (!%p574_p2)
}
   0x9   :  { %s578_s10 = scalar_lea.vmem %s33_s25, 2048  ;;  %p583_p4 = scmp.lt.s32.totalorder %s33_s25, %s33_s25 }
   0xa   :  { %p579_p3 = scmp.ne.s32.totalorder %s33_s25, %s578_s10  ;;  %p584_p5 = scmp.lt.s32.totalorder %s578_s10, %s578_s10 }
   0xc   :  { %p585_p6 = por %p584_p5, %p583_p4 }
   0xe   :  { %p586_p7 = pnand %p585_p6, %p579_p3 }
  0x10   :  { %589 = shalt.err (!%p586_p7)
}
  0x11   :  { %s663_s11 = smov 64   ;;  %s664_s12 = smov 4  }
  0x12   :  { %38 = dma.hbm_to_vmem [thread:$0]  %s781_s1, 2048, %s33_s25, [#allocation6], %s663_s11, %s663_s11, %s664_s12  }
  0x13   :  { %s665_s15 = smov [#allocation2]   ;;  %s590_s19 = scalar_lea.hbm %s780_s0, 512 }
  0x14   :  { %s20_s16 = sshll.u32 %s665_s15, 4  ;;  %p591_p8 = scmp.ne.s32.totalorder %s780_s0, %s590_s19  ;;  %s21_s16 = int_to_ptr.vmem [resolvable:$true] %s20_s16 }
  0x15   :  { %p594_p9 = scmp.lt.u32.totalorder %s590_s19, %s780_s0 }
  0x17   :  { %p596_p10 = pnand %p594_p9, %p591_p8 }
  0x19   :  { %599 = shalt.err (!%p596_p10)
}
  0x1a   :  { %s600_s24 = scalar_lea.vmem %s21_s16, 512  ;;  %p605_p12 = scmp.lt.s32.totalorder %s21_s16, %s21_s16 }
  0x1b   :  { %p601_p11 = scmp.ne.s32.totalorder %s21_s16, %s600_s24  ;;  %p606_p13 = scmp.lt.s32.totalorder %s600_s24, %s600_s24 }
  0x1d   :  { %p607_p0 = por %p606_p13, %p605_p12 }
  0x1f   :  { %p608_p1 = pnand %p607_p0, %p601_p11 }
  0x21   :  { %611 = shalt.err (!%p608_p1)
}
  0x22   :  { %s666_s1 = smov 256   ;;  %s667_s25 = smov 16  }
  0x23   :  { %26 = dma.hbm_to_vmem [thread:$0]  %s780_s0, 512, %s21_s16, [#allocation3], %s666_s1, %s666_s1, %s667_s25  }
  0x24   :  { %s668_s28 = smov [#allocation7]   ;;  %s612_s9 = scalar_lea.hbm %s783_s3, 1024 }
  0x25   :  { %s46_s29 = sshll.u32 %s668_s28, 4  ;;  %p613_p2 = scmp.ne.s32.totalorder %s783_s3, %s612_s9  ;;  %s47_s29 = int_to_ptr.vmem [resolvable:$true] %s46_s29 }
  0x26   :  { %p616_p3 = scmp.lt.u32.totalorder %s612_s9, %s783_s3 }
  0x28   :  { %p618_p4 = pnand %p616_p3, %p613_p2 }
  0x2a   :  { %621 = shalt.err (!%p618_p4)
}
  0x2b   :  { %s622_s17 = scalar_lea.vmem %s47_s29, 1024  ;;  %p627_p6 = scmp.lt.s32.totalorder %s47_s29, %s47_s29 }
  0x2c   :  { %p623_p5 = scmp.ne.s32.totalorder %s47_s29, %s622_s17  ;;  %p628_p7 = scmp.lt.s32.totalorder %s622_s17, %s622_s17 }
  0x2e   :  { %p629_p8 = por %p628_p7, %p627_p6 }
  0x30   :  { %p630_p9 = pnand %p629_p8, %p623_p5 }
  0x32   :  { %633 = shalt.err (!%p630_p9)
}
  0x33   :  { %52 = dma.hbm_to_vmem [thread:$0]  %s783_s3, 1024, %s47_s29, [#allocation6], %s663_s11, %s663_s11, %s664_s12  }
  0x34   :  { %656 = dma.done.wait [#allocation3], 512  }
  0x35   :  { %657 = vsyncadd [#allocation3], 4294966784 }
  0x36   :  { %658 = dma.done.wait [#allocation6], 3072  }
  0x37   :  { %659 = vsyncadd [#allocation6], 4294964224  ;;  %v536_v0 = vld [vmem:[#allocation5 + $0x40] sm:$0xff]   ;;  %v538_v2 = vld [vmem:[#allocation5 + $0x48] sm:$0xff]   ;;  %v669_v23 = vmov 0.0   ;;  %vm670_vm0 = vmmov 0  }
  0x38   :  { %v537_v1 = vld [vmem:[#allocation5] sm:$0xff]   ;;  %473 = vmatprep.subr.bf16.mxu0 %v536_v0  ;;  %v539_v3 = vld [vmem:[#allocation5 + $0x8] sm:$0xff]   ;;  %v540_v4 = vld [vmem:[#allocation5 + $0x50] sm:$0xff]   ;;  %504 = vmatprep.subr.bf16.mxu1 %v669_v23  ;;  %s671_s21 = smov [#allocation8]  }
  0x39   :  { %474 = vmatpush3.bf16.msra.mxu0 %v537_v1  ;;  %v541_v5 = vld [vmem:[#allocation5 + $0x10] sm:$0xff]   ;;  %v542_v6 = vld [vmem:[#allocation5 + $0x58] sm:$0xff]   ;;  %v544_v8 = vld [vmem:[#allocation5 + $0x60] sm:$0xff]   ;;  %520 = vmatprep.mubr.msk.bf16.mxu1 %vm670_vm0, %v669_v23  ;;  %s432_s22 = sshll.u32 %s671_s21, 4  ;;  %s433_s22 = int_to_ptr.vmem [resolvable:$true] %s432_s22 }
  0x3a   :  { %475 = vmatprep.subr.bf16.mxu0 %v538_v2  ;;  %v543_v7 = vld [vmem:[#allocation5 + $0x18] sm:$0xff]   ;;  %v545_v9 = vld [vmem:[#allocation5 + $0x20] sm:$0xff]   ;;  %v546_v10 = vld [vmem:[#allocation5 + $0x68] sm:$0xff]   ;;  %s634_s23 = scalar_lea.vmem %s433_s22, 256  ;;  %p639_p11 = scmp.lt.s32.totalorder %s433_s22, %s433_s22 }
  0x3b   :  { %v70_v11 = vld [vmem:[#allocation2 + $0x8] sm:$0xff]  ;;  %v72_v12 = vld [vmem:[#allocation2 + $0x18] sm:$0xff]  ;;  %v548_v15 = vld [vmem:[#allocation5 + $0x70] sm:$0xff]   ;;  %p635_p10 = scmp.ne.s32.totalorder %s433_s22, %s634_s23  ;;  %p640_p12 = scmp.lt.s32.totalorder %s634_s23, %s634_s23 }
  0x3c   :  { %v547_v13 = vld [vmem:[#allocation5 + $0x28] sm:$0xff]   ;;  %v74_v14 = vpack.c.bf16 %v72_v12, %v70_v11  ;;  %v549_v16 = vld [vmem:[#allocation5 + $0x30] sm:$0xff]   ;;  %v550_v17 = vld [vmem:[#allocation5 + $0x78] sm:$0xff]  }
  0x3d   :  { %476 = vmatpush3.bf16.msra.mxu0 %v539_v3  ;;  %v551_v18 = vld [vmem:[#allocation5 + $0x38] sm:$0xff]   ;;  %v69_v19 = vld [vmem:[#allocation2] sm:$0xff]  ;;  %v71_v20 = vld [vmem:[#allocation2 + $0x10] sm:$0xff]  ;;  %p641_p13 = por %p640_p12, %p639_p11 }
  0x3e   :  { %477 = vmatprep.subr.bf16.mxu0 %v540_v4  ;;  %242 = vmatprep.mubr.bf16.mxu0 %v74_v14  ;;  %v73_v21 = vpack.c.bf16 %v71_v20, %v69_v19  ;;  %v552_v22 = vld [vmem:[#allocation7] sm:$0xff]   ;;  %v553_v24 = vld [vmem:[#allocation7 + $0x8] sm:$0xff]   ;;  %v554_v25 = vld [vmem:[#allocation7 + $0x10] sm:$0xff]  }
  0x3f   :  { %505 = vmatpush3.bf16.msra.mxu1 %v552_v22  ;;  %v555_v26 = vld [vmem:[#allocation7 + $0x18] sm:$0xff]   ;;  %v556_v27 = vld [vmem:[#allocation7 + $0x20] sm:$0xff]   ;;  %v557_v28 = vld [vmem:[#allocation7 + $0x28] sm:$0xff]   ;;  %p642_p0 = pnand %p641_p13, %p635_p10 }
  0x40   :  { %506 = vmatprep.subr.bf16.mxu1 %v669_v23  ;;  %v558_v29 = vld [vmem:[#allocation7 + $0x30] sm:$0xff]   ;;  %v559_v30 = vld [vmem:[#allocation7 + $0x38] sm:$0xff]   ;;  %v445_v32 = vld [vmem:[%s782_s2] ss:$0 sm:$0xff] }
  0x41   :  { %478 = vmatpush3.bf16.msra.mxu0 %v541_v5  ;;  %v462_v59 = vld [vmem:[%s784_s4] ss:$0 sm:$0xff] }
  0x42   :  { %479 = vmatprep.subr.bf16.mxu0 %v542_v6  ;;  %v471_v19 = vld [vmem:[%s785_s5] ss:$0 sm:$0xff] }
  0x43   :  { %507 = vmatpush3.bf16.msra.mxu1 %v553_v24 }
  0x44   :  { %508 = vmatprep.subr.bf16.mxu1 %v669_v23 }
  0x45   :  { %480 = vmatpush3.bf16.msra.mxu0 %v543_v7 }
  0x46   :  { %481 = vmatprep.subr.bf16.mxu0 %v544_v8 }
  0x47   :  { %509 = vmatpush3.bf16.msra.mxu1 %v554_v25 }
  0x48   :  { %510 = vmatprep.subr.bf16.mxu1 %v669_v23 }
  0x49   :  { %482 = vmatpush3.bf16.msra.mxu0 %v545_v9 }
  0x4a   :  { %483 = vmatprep.subr.bf16.mxu0 %v546_v10 }
  0x4b   :  { %511 = vmatpush3.bf16.msra.mxu1 %v555_v26 }
  0x4c   :  { %512 = vmatprep.subr.bf16.mxu1 %v669_v23 }
  0x4d   :  { %484 = vmatpush3.bf16.msra.mxu0 %v547_v13 }
  0x4e   :  { %485 = vmatprep.subr.bf16.mxu0 %v548_v15 }
  0x4f   :  { %513 = vmatpush3.bf16.msra.mxu1 %v556_v27 }
  0x50   :  { %514 = vmatprep.subr.bf16.mxu1 %v669_v23 }
  0x51   :  { %486 = vmatpush3.bf16.msra.mxu0 %v549_v16 }
  0x52   :  { %487 = vmatprep.subr.bf16.mxu0 %v550_v17 }
  0x53   :  { %515 = vmatpush3.bf16.msra.mxu1 %v557_v28 }
  0x54   :  { %516 = vmatprep.subr.bf16.mxu1 %v669_v23 }
  0x55   :  { %488 = vmatpush3.bf16.msra.mxu0 %v551_v18 }
  0x57   :  { %517 = vmatpush3.bf16.msra.mxu1 %v558_v29 }
  0x58   :  { %243 = vmatmul.mubr.bf16.vlgmr.msra.gmra.mrb[0].mxu0 %v73_v21  ;;  %518 = vmatprep.subr.bf16.mxu1 %v669_v23  ;;  %v472_v21 = vld [vmem:[%s786_s6] ss:$0 sm:$0xff] }
  0x5b   :  { %519 = vmatpush3.bf16.msra.mxu1 %v559_v30 }
 0x12b   :  { %v489_v31 = vpop.f32.mrb[0].mxu0 }
 0x12c   :  { %v490_v33 = vpop.f32.mrb[1].mxu0 }
 0x12d   :  { %v491_v34 = vadd.f32 %v490_v33, %v489_v31  ;;  %v492_v35 = vpop.f32.mrb[2].mxu0 }
 0x12e   :  { %v493_v36 = vpop.f32.mrb[3].mxu0 }
 0x12f   :  { %v245_v37 = vadd.f32 %v491_v34, %v445_v32  ;;  %v494_v38 = vadd.f32 %v493_v36, %v492_v35 }
 0x131   :  { %v248_v39 = vadd.f32 %v494_v38, %v445_v32  ;;  %v253_v40 = vmul.f32 0.044715, %v245_v37  ;;  %v251_v53 = vmul.f32 0.5, %v245_v37 }
 0x133   :  { %v254_v41 = vmul.f32 0.044715, %v248_v39  ;;  %v255_v42 = vmul.f32 %v253_v40, %v245_v37  ;;  %v252_v54 = vmul.f32 0.5, %v248_v39 }
 0x135   :  { %v256_v43 = vmul.f32 %v254_v41, %v248_v39  ;;  %v257_v44 = vmul.f32 %v255_v42, %v245_v37 }
 0x137   :  { %v258_v45 = vmul.f32 %v256_v43, %v248_v39  ;;  %v259_v46 = vadd.f32 %v257_v44, %v245_v37 }
 0x139   :  { %v260_v47 = vadd.f32 %v258_v45, %v248_v39  ;;  %v261_v48 = vmul.f32 0.7978846, %v259_v46 }
 0x13b   :  { %v262_v49 = vmul.f32 0.7978846, %v260_v47  ;;  %560 = vtanh.f32 %v261_v48 }
 0x13d   :  { %562 = vtanh.f32 %v262_v49 }
 0x145   :  { %v561_v50 = vpop.eup %560 }
 0x146   :  { %v265_v51 = vadd.f32 1.0, %v561_v50 }
 0x147   :  { %v563_v52 = vpop.eup %562 }
 0x148   :  { %v266_v55 = vadd.f32 1.0, %v563_v52  ;;  %v267_v56 = vmul.f32 %v265_v51, %v251_v53 }
 0x14a   :  { %v268_v57 = vmul.f32 %v266_v55, %v252_v54 }
 0x14c   :  { %v269_v58 = vpack.c.bf16 %v268_v57, %v267_v56 }
 0x14e   :  { %521 = vmatmul.mubr.bf16.vlgmr.msra.gmra.mrb[0].mxu1 %v269_v58 }
 0x221   :  { %v375_v60 = vpop.f32.mrb[0].mxu1 }
 0x222   :  { %v376_v61 = vadd.f32 %v462_v59, %v375_v60  ;;  %v522_v62 = vpop.f32.mrb[1].mxu1 }
 0x223   :  { %v378_v63 = vpop.f32.mrb[2].mxu1 }
 0x224   :  { %v379_v0 = vadd.f32 %v462_v59, %v378_v63  ;;  %v523_v1 = vpop.f32.mrb[3].mxu1  ;;  %v382_v2 = vadd.f32 %v376_v61, %v245_v37 }
 0x226   :  { %384 = vadd.xlane.f32.xlu0 %v382_v2  ;;  %v383_v3 = vadd.f32 %v379_v0, %v248_v39 }
 0x22a   :  { %386 = vadd.xlane.f32.xlu0 %v383_v3 }
 0x2b3   :  { %v385_v4 = vpop.xlane.xlu0 %384 }
 0x2b4   :  { %v389_v5 = vmul.f32 0.0078125, %v385_v4 }
 0x2b6   :  { %v391_v6 = vsub.f32 %v382_v2, %v389_v5 }
 0x2b7   :  { %v387_v7 = vpop.xlane.xlu0 %386 }
 0x2b8   :  { %v390_v8 = vmul.f32 0.0078125, %v387_v7  ;;  %v393_v9 = vmul.f32 %v391_v6, %v391_v6 }
 0x2ba   :  { %v392_v10 = vsub.f32 %v383_v3, %v390_v8  ;;  %395 = vadd.xlane.f32.xlu1 %v393_v9 }
 0x2bc   :  { %v394_v11 = vmul.f32 %v392_v10, %v392_v10 }
 0x2be   :  { %397 = vadd.xlane.f32.xlu1 %v394_v11 }
 0x347   :  { %v396_v12 = vpop.xlane.xlu1 %395 }
 0x348   :  { %v399_v13 = vmul.f32 0.0078125, %v396_v12 }
 0x34a   :  { %v401_v14 = vadd.f32 1e-05, %v399_v13 }
 0x34b   :  { %v398_v15 = vpop.xlane.xlu1 %397 }
 0x34c   :  { %564 = vrsqrt.f32 %v401_v14  ;;  %v400_v16 = vmul.f32 0.0078125, %v398_v15 }
 0x34e   :  { %v402_v17 = vadd.f32 1e-05, %v400_v16 }
 0x350   :  { %566 = vrsqrt.f32 %v402_v17 }
 0x356   :  { %v565_v18 = vpop.eup %564 }
 0x357   :  { %v405_v20 = vmul.f32 %v565_v18, %v391_v6 }
 0x359   :  { %v414_v22 = vmul.f32 %v471_v19, %v405_v20 }
 0x35a   :  { %v567_v23 = vpop.eup %566 }
 0x35b   :  { %v406_v24 = vmul.f32 %v567_v23, %v392_v10  ;;  %v423_v25 = vadd.f32 %v472_v21, %v414_v22 }
 0x35d   :  { %v415_v26 = vmul.f32 %v471_v19, %v406_v24  ;;  %425 = vst [vmem:[#allocation8] sm:$0xff] %v423_v25 }
 0x35f   :  { %v424_v27 = vadd.f32 %v472_v21, %v415_v26 }
 0x361   :  { %426 = vst [vmem:[#allocation8 + $0x8] sm:$0xff] %v424_v27 }
 0x362   :  { %645 = shalt.err (!%p642_p0)
}
 0x363   :  { %s646_s24 = scalar_lea.hbm %s787_s7, 256 }
 0x364   :  { %p647_p1 = scmp.ne.s32.totalorder %s787_s7, %s646_s24  ;;  %p650_p2 = scmp.lt.u32.totalorder %s646_s24, %s787_s7 }
 0x366   :  { %p652_p3 = pnand %p650_p2, %p647_p1 }
 0x368   :  { %655 = shalt.err (!%p652_p3)
}
 0x369   :  { %s672_s28 = smov 128   ;;  %s673_s29 = smov 8  }
 0x36a   :  { %438 = dma.vmem_to_hbm [thread:$0]  %s433_s22, 256, %s787_s7, [#allocation4], %s672_s28, %s672_s28, %s673_s29  }
 0x36b   :  { %660 = dma.done.wait [#allocation4], 256  }
 0x36c   :  { %661 = vsyncadd [#allocation4], 4294967040 }
 0x36d   :  { %442 = vsyncpa [#allocation3], 1 }
 0x36e   :  { %443 = vsyncpa [#allocation6], 1 }
 0x36f   :  { %444 = vsyncpa [#allocation4], 1 }

// kernel: tpu_custom_call.1
= control target key start
LH: loop header
LB: loop body
LE: loop exit
PB: predicated region body
PF: predicated region fallthrough
CT: control target
= control target key end

     0   :  { %12 = vsyncpa [#allocation3], 0  ;;  %s780_s0 = inlined_call_operand.hbm [shape: f32[16,256], index: 0, kind: input, shape index: {}]   ;;  %s781_s1 = inlined_call_operand.hbm [shape: bf16[256,128], index: 1, kind: input, shape index: {}]   ;;  %s782_s2 = inlined_call_operand.vmem [shape: f32[1,128], index: 2, kind: input, shape index: {}]   ;;  %s783_s3 = inlined_call_operand.hbm [shape: bf16[128,128], index: 3, kind: input, shape index: {}]   ;;  %s784_s4 = inlined_call_operand.vmem [shape: f32[1,128], index: 4, kind: input, shape index: {}]   ;;  %s785_s5 = inlined_call_operand.vmem [shape: f32[1,128], index: 5, kind: input, shape index: {}]   ;;  %s786_s6 = inlined_call_operand.vmem [shape: f32[1,128], index: 6, kind: input, shape index: {}]   ;;  %s787_s7 = inlined_call_operand.hbm [shape: f32[16,128], index: 7, kind: output, shape index: {}]  }
   0x1   :  { %13 = vsyncpa [#allocation6], 0 }
   0x2   :  { %14 = vsyncpa [#allocation4], 0  ;;  %s662_s24 = smov [#allocation5]   ;;  %s568_s28 = scalar_lea.hbm %s781_s1, 2048 }
   0x3   :  { %s32_s25 = sshll.u32 %s662_s24, 4  ;;  %p569_p0 = scmp.ne.s32.totalorder %s781_s1, %s568_s28  ;;  %s33_s25 = int_to_ptr.vmem [resolvable:$true] %s32_s25 }
   0x4   :  { %p572_p1 = scmp.lt.u32.totalorder %s568_s28, %s781_s1 }
   0x6   :  { %p574_p2 = pnand %p572_p1, %p569_p0 }
   0x8   :  { %577 = shalt.err (!%p574_p2)
}
   0x9   :  { %s578_s10 = scalar_lea.vmem %s33_s25, 2048  ;;  %p583_p4 = scmp.lt.s32.totalorder %s33_s25, %s33_s25 }
   0xa   :  { %p579_p3 = scmp.ne.s32.totalorder %s33_s25, %s578_s10  ;;  %p584_p5 = scmp.lt.s32.totalorder %s578_s10, %s578_s10 }
   0xc   :  { %p585_p6 = por %p584_p5, %p583_p4 }
   0xe   :  { %p586_p7 = pnand %p585_p6, %p579_p3 }
  0x10   :  { %589 = shalt.err (!%p586_p7)
}
  0x11   :  { %s663_s11 = smov 64   ;;  %s664_s12 = smov 4  }
  0x12   :  { %38 = dma.hbm_to_vmem [thread:$0]  %s781_s1, 2048, %s33_s25, [#allocation6], %s663_s11, %s663_s11, %s664_s12  }
  0x13   :  { %s665_s15 = smov [#allocation2]   ;;  %s590_s19 = scalar_lea.hbm %s780_s0, 512 }
  0x14   :  { %s20_s16 = sshll.u32 %s665_s15, 4  ;;  %p591_p8 = scmp.ne.s32.totalorder %s780_s0, %s590_s19  ;;  %s21_s16 = int_to_ptr.vmem [resolvable:$true] %s20_s16 }
  0x15   :  { %p594_p9 = scmp.lt.u32.totalorder %s590_s19, %s780_s0 }
  0x17   :  { %p596_p10 = pnand %p594_p9, %p591_p8 }
  0x19   :  { %599 = shalt.err (!%p596_p10)
}
  0x1a   :  { %s600_s24 = scalar_lea.vmem %s21_s16, 512  ;;  %p605_p12 = scmp.lt.s32.totalorder %s21_s16, %s21_s16 }
  0x1b   :  { %p601_p11 = scmp.ne.s32.totalorder %s21_s16, %s600_s24  ;;  %p606_p13 = scmp.lt.s32.totalorder %s600_s24, %s600_s24 }
  0x1d   :  { %p607_p0 = por %p606_p13, %p605_p12 }
  0x1f   :  { %p608_p1 = pnand %p607_p0, %p601_p11 }
  0x21   :  { %611 = shalt.err (!%p608_p1)
}
  0x22   :  { %s666_s1 = smov 256   ;;  %s667_s25 = smov 16  }
  0x23   :  { %26 = dma.hbm_to_vmem [thread:$0]  %s780_s0, 512, %s21_s16, [#allocation3], %s666_s1, %s666_s1, %s667_s25  }
  0x24   :  { %s668_s28 = smov [#allocation7]   ;;  %s612_s9 = scalar_lea.hbm %s783_s3, 1024 }
  0x25   :  { %s46_s29 = sshll.u32 %s668_s28, 4  ;;  %p613_p2 = scmp.ne.s32.totalorder %s783_s3, %s612_s9  ;;  %s47_s29 = int_to_ptr.vmem [resolvable:$true] %s46_s29 }
  0x26   :  { %p616_p3 = scmp.lt.u32.totalorder %s612_s9, %s783_s3 }
  0x28   :  { %p618_p4 = pnand %p616_p3, %p613_p2 }
  0x2a   :  { %621 = shalt.err (!%p618_p4)
}
  0x2b   :  { %s622_s17 = scalar_lea.vmem %s47_s29, 1024  ;;  %p627_p6 = scmp.lt.s32.totalorder %s47_s29, %s47_s29 }
  0x2c   :  { %p623_p5 = scmp.ne.s32.totalorder %s47_s29, %s622_s17  ;;  %p628_p7 = scmp.lt.s32.totalorder %s622_s17, %s622_s17 }
  0x2e   :  { %p629_p8 = por %p628_p7, %p627_p6 }
  0x30   :  { %p630_p9 = pnand %p629_p8, %p623_p5 }
  0x32   :  { %633 = shalt.err (!%p630_p9)
}
  0x33   :  { %52 = dma.hbm_to_vmem [thread:$0]  %s783_s3, 1024, %s47_s29, [#allocation6], %s663_s11, %s663_s11, %s664_s12  }
  0x34   :  { %656 = dma.done.wait [#allocation3], 512  }
  0x35   :  { %657 = vsyncadd [#allocation3], 4294966784 }
  0x36   :  { %658 = dma.done.wait [#allocation6], 3072  }
  0x37   :  { %659 = vsyncadd [#allocation6], 4294964224  ;;  %v536_v0 = vld [vmem:[#allocation5 + $0x40] sm:$0xff]   ;;  %v538_v2 = vld [vmem:[#allocation5 + $0x48] sm:$0xff]   ;;  %v669_v23 = vmov 0.0   ;;  %vm670_vm0 = vmmov 0  }
  0x38   :  { %v537_v1 = vld [vmem:[#allocation5] sm:$0xff]   ;;  %473 = vmatprep.subr.bf16.mxu0 %v536_v0  ;;  %v539_v3 = vld [vmem:[#allocation5 + $0x8] sm:$0xff]   ;;  %v540_v4 = vld [vmem:[#allocation5 + $0x50] sm:$0xff]   ;;  %504 = vmatprep.subr.bf16.mxu1 %v669_v23  ;;  %s671_s21 = smov [#allocation8]  }
  0x39   :  { %474 = vmatpush3.bf16.msra.mxu0 %v537_v1  ;;  %v541_v5 = vld [vmem:[#allocation5 + $0x10] sm:$0xff]   ;;  %v542_v6 = vld [vmem:[#allocation5 + $0x58] sm:$0xff]   ;;  %v544_v8 = vld [vmem:[#allocation5 + $0x60] sm:$0xff]   ;;  %520 = vmatprep.mubr.msk.bf16.mxu1 %vm670_vm0, %v669_v23  ;;  %s432_s22 = sshll.u32 %s671_s21, 4  ;;  %s433_s22 = int_to_ptr.vmem [resolvable:$true] %s432_s22 }
  0x3a   :  { %475 = vmatprep.subr.bf16.mxu0 %v538_v2  ;;  %v543_v7 = vld [vmem:[#allocation5 + $0x18] sm:$0xff]   ;;  %v545_v9 = vld [vmem:[#allocation5 + $0x20] sm:$0xff]   ;;  %v546_v10 = vld [vmem:[#allocation5 + $0x68] sm:$0xff]   ;;  %s634_s23 = scalar_lea.vmem %s433_s22, 256  ;;  %p639_p11 = scmp.lt.s32.totalorder %s433_s22, %s433_s22 }
  0x3b   :  { %v70_v11 = vld [vmem:[#allocation2 + $0x8] sm:$0xff]  ;;  %v72_v12 = vld [vmem:[#allocation2 + $0x18] sm:$0xff]  ;;  %v548_v15 = vld [vmem:[#allocation5 + $0x70] sm:$0xff]   ;;  %p635_p10 = scmp.ne.s32.totalorder %s433_s22, %s634_s23  ;;  %p640_p12 = scmp.lt.s32.totalorder %s634_s23, %s634_s23 }
  0x3c   :  { %v547_v13 = vld [vmem:[#allocation5 + $0x28] sm:$0xff]   ;;  %v74_v14 = vpack.c.bf16 %v72_v12, %v70_v11  ;;  %v549_v16 = vld [vmem:[#allocation5 + $0x30] sm:$0xff]   ;;  %v550_v17 = vld [vmem:[#allocation5 + $0x78] sm:$0xff]  }
  0x3d   :  { %476 = vmatpush3.bf16.msra.mxu0 %v539_v3  ;;  %v551_v18 = vld [vmem:[#allocation5 + $0x38] sm:$0xff]   ;;  %v69_v19 = vld [vmem:[#allocation2] sm:$0xff]  ;;  %v71_v20 = vld [vmem:[#allocation2 + $0x10] sm:$0xff]  ;;  %p641_p13 = por %p640_p12, %p639_p11 }
  0x3e   :  { %477 = vmatprep.subr.bf16.mxu0 %v540_v4  ;;  %242 = vmatprep.mubr.bf16.mxu0 %v74_v14  ;;  %v73_v21 = vpack.c.bf16 %v71_v20, %v69_v19  ;;  %v552_v22 = vld [vmem:[#allocation7] sm:$0xff]   ;;  %v553_v24 = vld [vmem:[#allocation7 + $0x8] sm:$0xff]   ;;  %v554_v25 = vld [vmem:[#allocation7 + $0x10] sm:$0xff]  }
  0x3f   :  { %505 = vmatpush3.bf16.msra.mxu1 %v552_v22  ;;  %v555_v26 = vld [vmem:[#allocation7 + $0x18] sm:$0xff]   ;;  %v556_v27 = vld [vmem:[#allocation7 + $0x20] sm:$0xff]   ;;  %v557_v28 = vld [vmem:[#allocation7 + $0x28] sm:$0xff]   ;;  %p642_p0 = pnand %p641_p13, %p635_p10 }
  0x40   :  { %506 = vmatprep.subr.bf16.mxu1 %v669_v23  ;;  %v558_v29 = vld [vmem:[#allocation7 + $0x30] sm:$0xff]   ;;  %v559_v30 = vld [vmem:[#allocation7 + $0x38] sm:$0xff]   ;;  %v445_v32 = vld [vmem:[%s782_s2] ss:$0 sm:$0xff] }
  0x41   :  { %478 = vmatpush3.bf16.msra.mxu0 %v541_v5  ;;  %v462_v59 = vld [vmem:[%s784_s4] ss:$0 sm:$0xff] }
  0x42   :  { %479 = vmatprep.subr.bf16.mxu0 %v542_v6  ;;  %v471_v19 = vld [vmem:[%s785_s5] ss:$0 sm:$0xff] }
  0x43   :  { %507 = vmatpush3.bf16.msra.mxu1 %v553_v24 }
  0x44   :  { %508 = vmatprep.subr.bf16.mxu1 %v669_v23 }
  0x45   :  { %480 = vmatpush3.bf16.msra.mxu0 %v543_v7 }
  0x46   :  { %481 = vmatprep.subr.bf16.mxu0 %v544_v8 }
  0x47   :  { %509 = vmatpush3.bf16.msra.mxu1 %v554_v25 }
  0x48   :  { %510 = vmatprep.subr.bf16.mxu1 %v669_v23 }
  0x49   :  { %482 = vmatpush3.bf16.msra.mxu0 %v545_v9 }
  0x4a   :  { %483 = vmatprep.subr.bf16.mxu0 %v546_v10 }
  0x4b   :  { %511 = vmatpush3.bf16.msra.mxu1 %v555_v26 }
  0x4c   :  { %512 = vmatprep.subr.bf16.mxu1 %v669_v23 }
  0x4d   :  { %484 = vmatpush3.bf16.msra.mxu0 %v547_v13 }
  0x4e   :  { %485 = vmatprep.subr.bf16.mxu0 %v548_v15 }
  0x4f   :  { %513 = vmatpush3.bf16.msra.mxu1 %v556_v27 }
  0x50   :  { %514 = vmatprep.subr.bf16.mxu1 %v669_v23 }
  0x51   :  { %486 = vmatpush3.bf16.msra.mxu0 %v549_v16 }
  0x52   :  { %487 = vmatprep.subr.bf16.mxu0 %v550_v17 }
  0x53   :  { %515 = vmatpush3.bf16.msra.mxu1 %v557_v28 }
  0x54   :  { %516 = vmatprep.subr.bf16.mxu1 %v669_v23 }
  0x55   :  { %488 = vmatpush3.bf16.msra.mxu0 %v551_v18 }
  0x57   :  { %517 = vmatpush3.bf16.msra.mxu1 %v558_v29 }
  0x58   :  { %243 = vmatmul.mubr.bf16.vlgmr.msra.gmra.mrb[0].mxu0 %v73_v21  ;;  %518 = vmatprep.subr.bf16.mxu1 %v669_v23  ;;  %v472_v21 = vld [vmem:[%s786_s6] ss:$0 sm:$0xff] }
  0x5b   :  { %519 = vmatpush3.bf16.msra.mxu1 %v559_v30 }
 0x12b   :  { %v489_v31 = vpop.f32.mrb[0].mxu0 }
 0x12c   :  { %v490_v33 = vpop.f32.mrb[1].mxu0 }
 0x12d   :  { %v491_v34 = vadd.f32 %v490_v33, %v489_v31  ;;  %v492_v35 = vpop.f32.mrb[2].mxu0 }
 0x12e   :  { %v493_v36 = vpop.f32.mrb[3].mxu0 }
 0x12f   :  { %v245_v37 = vadd.f32 %v491_v34, %v445_v32  ;;  %v494_v38 = vadd.f32 %v493_v36, %v492_v35 }
 0x131   :  { %v248_v39 = vadd.f32 %v494_v38, %v445_v32  ;;  %v253_v40 = vmul.f32 0.044715, %v245_v37  ;;  %v251_v53 = vmul.f32 0.5, %v245_v37 }
 0x133   :  { %v254_v41 = vmul.f32 0.044715, %v248_v39  ;;  %v255_v42 = vmul.f32 %v253_v40, %v245_v37  ;;  %v252_v54 = vmul.f32 0.5, %v248_v39 }
 0x135   :  { %v256_v43 = vmul.f32 %v254_v41, %v248_v39  ;;  %v257_v44 = vmul.f32 %v255_v42, %v245_v37 }
 0x137   :  { %v258_v45 = vmul.f32 %v256_v43, %v248_v39  ;;  %v259_v46 = vadd.f32 %v257_v44, %v245_v37 }
 0x139   :  { %v260_v47 = vadd.f32 %v258_v45, %v248_v39  ;;  %v261_v48 = vmul.f32 0.7978846, %v259_v46 }
 0x13b   :  { %v262_v49 = vmul.f32 0.7978846, %v260_v47  ;;  %560 = vtanh.f32 %v261_v48 }
 0x13d   :  { %562 = vtanh.f32 %v262_v49 }
 0x145   :  { %v561_v50 = vpop.eup %560 }
 0x146   :  { %v265_v51 = vadd.f32 1.0, %v561_v50 }
 0x147   :  { %v563_v52 = vpop.eup %562 }
 0x148   :  { %v266_v55 = vadd.f32 1.0, %v563_v52  ;;  %v267_v56 = vmul.f32 %v265_v51, %v251_v53 }
 0x14a   :  { %v268_v57 = vmul.f32 %v266_v55, %v252_v54 }
 0x14c   :  { %v269_v58 = vpack.c.bf16 %v268_v57, %v267_v56 }
 0x14e   :  { %521 = vmatmul.mubr.bf16.vlgmr.msra.gmra.mrb[0].mxu1 %v269_v58 }
 0x221   :  { %v375_v60 = vpop.f32.mrb[0].mxu1 }
 0x222   :  { %v376_v61 = vadd.f32 %v462_v59, %v375_v60  ;;  %v522_v62 = vpop.f32.mrb[1].mxu1 }
 0x223   :  { %v378_v63 = vpop.f32.mrb[2].mxu1 }
 0x224   :  { %v379_v0 = vadd.f32 %v462_v59, %v378_v63  ;;  %v523_v1 = vpop.f32.mrb[3].mxu1  ;;  %v382_v2 = vadd.f32 %v376_v61, %v245_v37 }
 0x226   :  { %384 = vadd.xlane.f32.xlu0 %v382_v2  ;;  %v383_v3 = vadd.f32 %v379_v0, %v248_v39 }
 0x22a   :  { %386 = vadd.xlane.f32.xlu0 %v383_v3 }
 0x2b3   :  { %v385_v4 = vpop.xlane.xlu0 %384 }
 0x2b4   :  { %v389_v5 = vmul.f32 0.0078125, %v385_v4 }
 0x2b6   :  { %v391_v6 = vsub.f32 %v382_v2, %v389_v5 }
 0x2b7   :  { %v387_v7 = vpop.xlane.xlu0 %386 }
 0x2b8   :  { %v390_v8 = vmul.f32 0.0078125, %v387_v7  ;;  %v393_v9 = vmul.f32 %v391_v6, %v391_v6 }
 0x2ba   :  { %v392_v10 = vsub.f32 %v383_v3, %v390_v8  ;;  %395 = vadd.xlane.f32.xlu1 %v393_v9 }
 0x2bc   :  { %v394_v11 = vmul.f32 %v392_v10, %v392_v10 }
 0x2be   :  { %397 = vadd.xlane.f32.xlu1 %v394_v11 }
 0x347   :  { %v396_v12 = vpop.xlane.xlu1 %395 }
 0x348   :  { %v399_v13 = vmul.f32 0.0078125, %v396_v12 }
 0x34a   :  { %v401_v14 = vadd.f32 1e-05, %v399_v13 }
 0x34b   :  { %v398_v15 = vpop.xlane.xlu1 %397 }
 0x34c   :  { %564 = vrsqrt.f32 %v401_v14  ;;  %v400_v16 = vmul.f32 0.0078125, %v398_v15 }
 0x34e   :  { %v402_v17 = vadd.f32 1e-05, %v400_v16 }
 0x350   :  { %566 = vrsqrt.f32 %v402_v17 }
 0x356   :  { %v565_v18 = vpop.eup %564 }
 0x357   :  { %v405_v20 = vmul.f32 %v565_v18, %v391_v6 }
 0x359   :  { %v414_v22 = vmul.f32 %v471_v19, %v405_v20 }
 0x35a   :  { %v567_v23 = vpop.eup %566 }
 0x35b   :  { %v406_v24 = vmul.f32 %v567_v23, %v392_v10  ;;  %v423_v25 = vadd.f32 %v472_v21, %v414_v22 }
 0x35d   :  { %v415_v26 = vmul.f32 %v471_v19, %v406_v24  ;;  %425 = vst [vmem:[#allocation8] sm:$0xff] %v423_v25 }
 0x35f   :  { %v424_v27 = vadd.f32 %v472_v21, %v415_v26 }
 0x361   :  { %426 = vst [vmem:[#allocation8 + $0x8] sm:$0xff] %v424_v27 }
 0x362   :  { %645 = shalt.err (!%p642_p0)
}
 0x363   :  { %s646_s24 = scalar_lea.hbm %s787_s7, 256 }
 0x364   :  { %p647_p1 = scmp.ne.s32.totalorder %s787_s7, %s646_s24  ;;  %p650_p2 = scmp.lt.u32.totalorder %s646_s24, %s787_s7 }
 0x366   :  { %p652_p3 = pnand %p650_p2, %p647_p1 }
 0x368   :  { %655 = shalt.err (!%p652_p3)
}
 0x369   :  { %s672_s28 = smov 128   ;;  %s673_s29 = smov 8  }
 0x36a   :  { %438 = dma.vmem_to_hbm [thread:$0]  %s433_s22, 256, %s787_s7, [#allocation4], %s672_s28, %s672_s28, %s673_s29  }
 0x36b   :  { %660 = dma.done.wait [#allocation4], 256  }
 0x36c   :  { %661 = vsyncadd [#allocation4], 4294967040 }
 0x36d   :  { %442 = vsyncpa [#allocation3], 1 }
 0x36e   :  { %443 = vsyncpa [#allocation6], 1 }
 0x36f   :  { %444 = vsyncpa [#allocation4], 1 }

</bundles_post_ra>
